<compile_context>
chip_gen: v6e
topology: v6e:2x2x1
jax: 0.10.0
libtpu: 0.0.40
codegen_flags: <defaults>
</compile_context>

<pallas_src>
import functools

import jax
import jax.numpy as jnp
from jax import lax
from jax.experimental import pallas as pl
from jax.experimental.pallas import tpu as pltpu


# ----------------------------- fused kernel --------------------------------

def _fused_attention_kernel(x_ref, wqkv_ref, wo_ref, b_ref, o_ref,
                            *, heads, dim_head):
    """One batch-block per grid point: fused QKV proj + per-head attention +
    output projection, all resident in VMEM/vregs (no HBM intermediates)."""
    bt, n, dim = x_ref.shape
    inner = heads * dim_head

    w_qkv = wqkv_ref[...]                                 # (dim, 3*inner) bf16
    bias = b_ref[...].astype(jnp.float32)                 # (1, dim)

    for bi in range(bt):                                  # static, small
        x = x_ref[bi].astype(jnp.bfloat16)                # (N, dim) bf16 for MXU

        # One wide QKV matmul: 3*inner output lanes on the MXU instead of
        # 3*heads separate dim_head(=16)-lane matmuls.  Scale is already folded
        # into the W_q columns (wrapper), so no extra multiply here.
        qkv = jnp.dot(x, w_qkv, preferred_element_type=jnp.float32)   # (N, 3*inner)
        qkv_b = qkv.astype(jnp.bfloat16)

        acc = jnp.zeros((n, dim), jnp.float32) + bias     # bias added once, f32

        for h in range(heads):                            # static unrolled loop
            lo = h * dim_head
            q = qkv_b[:, lo:lo + dim_head]                            # (N, d)
            k = qkv_b[:, inner + lo:inner + lo + dim_head]            # (N, d)
            v = qkv_b[:, 2 * inner + lo:2 * inner + lo + dim_head]    # (N, d)

            # q @ k^T without materializing a transpose: contract last axes.
            dots = lax.dot_general(q, k, (((1,), (1,)), ((), ())),
                                   preferred_element_type=jnp.float32)  # (N, N)

            # Numerically-stable softmax, normalization deferred past the
            # attn@v matmul: (N, d) multiply instead of (N, N).
            m = jnp.max(dots, axis=-1, keepdims=True)
            e = jnp.exp(dots - m)                                        # f32
            r = pl.reciprocal(jnp.sum(e, axis=-1, keepdims=True),
                              approx=True)                               # (N, 1)

            out_h = jnp.dot(e.astype(jnp.bfloat16), v,
                            preferred_element_type=jnp.float32) * r      # (N, d)

            # Output projection accumulated per head:
            #   acc += out_h @ W_out[h*d:(h+1)*d, :]
            acc = acc + jnp.dot(out_h.astype(jnp.bfloat16), wo_ref[h],
                                preferred_element_type=jnp.float32)

        o_ref[bi] = acc.astype(o_ref.dtype)


# ------------------------------- wrapper ------------------------------------

def attention_forward(x, w_qkv, w_out, b_out, *, heads, dim_head, batch_block=1):
    B, N, dim = x.shape
    inner = heads * dim_head
    assert w_qkv.shape == (dim, 3 * inner)
    assert w_out.shape == (inner, dim)
    assert b_out.shape == (dim,)
    assert B % batch_block == 0
    scale = dim_head ** (-0.5)

    # One-time weight prep (outside the kernel):
    #  * fold the softmax scale into the W_q columns,
    #  * cast MXU-side weights to bf16 (halves DMA bytes + VMEM),
    #  * per-head slabs for W_out so the kernel only does aligned first-axis
    #    ref indexing.
    wq_scaled = w_qkv[:, :inner] * scale
    w_qkv_b = jnp.concatenate([wq_scaled, w_qkv[:, inner:]], axis=1).astype(jnp.bfloat16)
    w_o_b = w_out.reshape(heads, dim_head, dim).astype(jnp.bfloat16)    # (H, d, dim)
    b2 = b_out.reshape(1, dim).astype(jnp.float32)                      # lane-aligned row

    flops = B * (2 * N * dim * 3 * inner                 # fused qkv projection
                 + heads * (2 * N * N * dim_head         # q @ k^T
                            + 2 * N * N * dim_head       # e @ v
                            + 2 * N * dim_head * dim))   # out projection
    transcendentals = B * heads * N * N                  # exp
    bytes_accessed = (x.size * x.dtype.itemsize
                      + w_qkv_b.size * 2 + w_o_b.size * 2 + b2.size * 4
                      + B * N * dim * x.dtype.itemsize)

    kernel = functools.partial(_fused_attention_kernel,
                               heads=heads, dim_head=dim_head)

    return pl.pallas_call(
        kernel,
        out_shape=jax.ShapeDtypeStruct((B, N, dim), x.dtype),
        grid=(B // batch_block,),
        in_specs=[
            pl.BlockSpec((batch_block, N, dim), lambda b: (b, 0, 0)),      # x
            pl.BlockSpec((dim, 3 * inner), lambda b: (0, 0)),              # W_qkv (bf16)
            pl.BlockSpec((heads, dim_head, dim), lambda b: (0, 0, 0)),     # W_out (bf16)
            pl.BlockSpec((1, dim), lambda b: (0, 0)),                      # bias
        ],
        out_specs=pl.BlockSpec((batch_block, N, dim), lambda b: (b, 0, 0)),
        compiler_params=pltpu.CompilerParams(
            dimension_semantics=("parallel",),
            vmem_limit_bytes=32 * 1024 * 1024,   # safe on v5e/v6e/v7x at these tiles
        ),
        cost_estimate=pl.CostEstimate(
            flops=flops,
            transcendentals=transcendentals,
            bytes_accessed=bytes_accessed,
        ),
    )(x, w_qkv_b, w_o_b, b2)


# ----------------------------- reference (plain JAX) -----------------------

def attention_reference(x, w_qkv, w_out, b_out, *, heads, dim_head):
    B, N, dim = x.shape
    inner = heads * dim_head
    scale = dim_head ** (-0.5)
    qkv = x @ w_qkv
    q, k, v = jnp.split(qkv, 3, axis=-1)
    rs = lambda t: t.reshape(B, N, heads, dim_head).transpose(0, 2, 1, 3)
    q, k, v = rs(q), rs(k), rs(v)
    dots = jnp.einsum("bhnd,bhmd->bhnm", q, k) * scale
    attn = jax.nn.softmax(dots, axis=-1)
    o = jnp.einsum("bhnm,bhmd->bhnd", attn, v)
    o = o.transpose(0, 2, 1, 3).reshape(B, N, inner)
    return o @ w_out + b_out


# --------------------------------- main ------------------------------------

if __name__ == "__main__":
    # Small, module-consistent shapes.
    B, N, dim = 2, 8, 32
    heads, dim_head = 4, 16
    inner = heads * dim_head

    key = jax.random.PRNGKey(0)
    k_x, k_qkv, k_out, k_b = jax.random.split(key, 4)

    x = jax.random.normal(k_x, (B, N, dim), dtype=jnp.float32)
    # Deterministic parameter init (synthetic, not a checkpoint load).
    w_qkv = jax.random.normal(k_qkv, (dim, 3 * inner), dtype=jnp.float32) * 0.05
    w_out = jax.random.normal(k_out, (inner, dim), dtype=jnp.float32) * 0.05
    b_out = jax.random.normal(k_b, (dim,), dtype=jnp.float32) * 0.01

    y = attention_forward(x, w_qkv, w_out, b_out, heads=heads, dim_head=dim_head)
    y = jax.block_until_ready(y)

    y_ref = attention_reference(x, w_qkv, w_out, b_out, heads=heads, dim_head=dim_head)
    assert y.shape == (B, N, dim)
    # Tolerance accounts for bf16 MXU operands + approx reciprocal (EUP vrcp).
    assert jnp.allclose(y, y_ref, atol=1e-2, rtol=1e-2), "mismatch vs reference"

    print("KERNEL_OK")
</pallas_src>

<mosaic_0001>
module attributes {stable_mosaic.version = 11 : i64} {
  func.func @_fused_attention_kernel(%arg0: i32, %arg1: memref<1x8x32xf32, #tpu.memory_space<vmem>>, %arg2: memref<32x192xbf16, #tpu.memory_space<vmem>>, %arg3: memref<4x16x32xbf16, #tpu.memory_space<vmem>>, %arg4: memref<1x32xf32, #tpu.memory_space<vmem>>, %arg5: memref<1x8x32xf32, #tpu.memory_space<vmem>>) attributes {dimension_semantics = [#tpu.dimension_semantics<parallel>], iteration_bounds = array<i64: 2>, scalar_prefetch = 0 : i64, scratch_operands = 0 : i64, tpu.core_type = #tpu.core_type<tc>, window_params = [{transform_indices = @transform_0, window_bounds = array<i64: 1, 8, 32>}, {pipeline_mode = #tpu.pipeline_mode<synchronous>, transform_indices = @transform_1, window_bounds = array<i64: 32, 192>}, {pipeline_mode = #tpu.pipeline_mode<synchronous>, transform_indices = @transform_2, window_bounds = array<i64: 4, 16, 32>}, {pipeline_mode = #tpu.pipeline_mode<synchronous>, transform_indices = @transform_3, window_bounds = array<i64: 1, 32>}, {transform_indices = @transform_4, window_bounds = array<i64: 1, 8, 32>}]} {
    %c0 = arith.constant 0 : index
    %c0_0 = arith.constant 0 : index
    %0 = vector.load %arg2[%c0, %c0_0] : memref<32x192xbf16, #tpu.memory_space<vmem>>, vector<32x192xbf16>
    %c0_1 = arith.constant 0 : index
    %c0_2 = arith.constant 0 : index
    %1 = vector.load %arg4[%c0_1, %c0_2] : memref<1x32xf32, #tpu.memory_space<vmem>>, vector<1x32xf32>
    %c0_3 = arith.constant 0 : index
    %c0_4 = arith.constant 0 : index
    %c0_5 = arith.constant 0 : index
    %2 = vector.load %arg1[%c0_3, %c0_4, %c0_5] : memref<1x8x32xf32, #tpu.memory_space<vmem>>, vector<1x8x32xf32>
    %3 = vector.shape_cast %2 : vector<1x8x32xf32> to vector<8x32xf32>
    %4 = arith.truncf %3 : vector<8x32xf32> to vector<8x32xbf16>
    %cst = arith.constant dense<0.000000e+00> : vector<8x192xf32>
    %5 = tpu.matmul %4, %0, %cst {dimension_numbers = #tpu.dot_dimension_numbers<[1], [0], [0], [1], [0, 0, 1, 1], [], []>} : vector<8x32xbf16>, vector<32x192xbf16>, vector<8x192xf32> -> vector<8x192xf32>
    %6 = arith.truncf %5 : vector<8x192xf32> to vector<8x192xbf16>
    %cst_6 = arith.constant 0.000000e+00 : f32
    %7 = vector.broadcast %cst_6 : f32 to vector<8x32xf32>
    %8 = vector.broadcast %1 : vector<1x32xf32> to vector<8x32xf32>
    %9 = arith.addf %7, %8 : vector<8x32xf32>
    %10 = vector.extract_strided_slice %6 {offsets = [0, 0], sizes = [8, 16], strides = [1, 1]} : vector<8x192xbf16> to vector<8x16xbf16>
    %11 = vector.extract_strided_slice %6 {offsets = [0, 64], sizes = [8, 16], strides = [1, 1]} : vector<8x192xbf16> to vector<8x16xbf16>
    %12 = vector.extract_strided_slice %6 {offsets = [0, 128], sizes = [8, 16], strides = [1, 1]} : vector<8x192xbf16> to vector<8x16xbf16>
    %cst_7 = arith.constant dense<0.000000e+00> : vector<8x8xf32>
    %13 = tpu.matmul %10, %11, %cst_7 {dimension_numbers = #tpu.dot_dimension_numbers<[1], [1], [0], [0], [0, 0, 1, 0], [], []>} : vector<8x16xbf16>, vector<8x16xbf16>, vector<8x8xf32> -> vector<8x8xf32>
    %cst_8 = arith.constant dense<0xFF800000> : vector<8xf32>
    %14 = vector.multi_reduction <maximumf>, %13, %cst_8 [1] : vector<8x8xf32> to vector<8xf32>
    %15 = vector.shape_cast %14 : vector<8xf32> to vector<8x1xf32>
    %16 = vector.broadcast %15 : vector<8x1xf32> to vector<8x8xf32>
    %17 = arith.subf %13, %16 : vector<8x8xf32>
    %18 = math.exp %17 : vector<8x8xf32>
    %cst_9 = arith.constant dense<0.000000e+00> : vector<8xf32>
    %19 = vector.multi_reduction <add>, %18, %cst_9 [1] : vector<8x8xf32> to vector<8xf32>
    %20 = vector.shape_cast %19 : vector<8xf32> to vector<8x1xf32>
    %21 = tpu.reciprocal %20 {approx = true} : vector<8x1xf32> -> vector<8x1xf32>
    %22 = arith.truncf %18 : vector<8x8xf32> to vector<8x8xbf16>
    %cst_10 = arith.constant dense<0.000000e+00> : vector<8x16xf32>
    %23 = tpu.matmul %22, %12, %cst_10 {dimension_numbers = #tpu.dot_dimension_numbers<[1], [0], [0], [1], [0, 0, 1, 1], [], []>} : vector<8x8xbf16>, vector<8x16xbf16>, vector<8x16xf32> -> vector<8x16xf32>
    %24 = vector.broadcast %21 : vector<8x1xf32> to vector<8x16xf32>
    %25 = arith.mulf %23, %24 : vector<8x16xf32>
    %26 = arith.truncf %25 : vector<8x16xf32> to vector<8x16xbf16>
    %c0_11 = arith.constant 0 : index
    %c0_12 = arith.constant 0 : index
    %c0_13 = arith.constant 0 : index
    %27 = vector.load %arg3[%c0_11, %c0_12, %c0_13] : memref<4x16x32xbf16, #tpu.memory_space<vmem>>, vector<1x16x32xbf16>
    %28 = vector.shape_cast %27 : vector<1x16x32xbf16> to vector<16x32xbf16>
    %cst_14 = arith.constant dense<0.000000e+00> : vector<8x32xf32>
    %29 = tpu.matmul %26, %28, %cst_14 {dimension_numbers = #tpu.dot_dimension_numbers<[1], [0], [0], [1], [0, 0, 1, 1], [], []>} : vector<8x16xbf16>, vector<16x32xbf16>, vector<8x32xf32> -> vector<8x32xf32>
    %30 = arith.addf %9, %29 : vector<8x32xf32>
    %31 = vector.extract_strided_slice %6 {offsets = [0, 16], sizes = [8, 16], strides = [1, 1]} : vector<8x192xbf16> to vector<8x16xbf16>
    %32 = vector.extract_strided_slice %6 {offsets = [0, 80], sizes = [8, 16], strides = [1, 1]} : vector<8x192xbf16> to vector<8x16xbf16>
    %33 = vector.extract_strided_slice %6 {offsets = [0, 144], sizes = [8, 16], strides = [1, 1]} : vector<8x192xbf16> to vector<8x16xbf16>
    %cst_15 = arith.constant dense<0.000000e+00> : vector<8x8xf32>
    %34 = tpu.matmul %31, %32, %cst_15 {dimension_numbers = #tpu.dot_dimension_numbers<[1], [1], [0], [0], [0, 0, 1, 0], [], []>} : vector<8x16xbf16>, vector<8x16xbf16>, vector<8x8xf32> -> vector<8x8xf32>
    %cst_16 = arith.constant dense<0xFF800000> : vector<8xf32>
    %35 = vector.multi_reduction <maximumf>, %34, %cst_16 [1] : vector<8x8xf32> to vector<8xf32>
    %36 = vector.shape_cast %35 : vector<8xf32> to vector<8x1xf32>
    %37 = vector.broadcast %36 : vector<8x1xf32> to vector<8x8xf32>
    %38 = arith.subf %34, %37 : vector<8x8xf32>
    %39 = math.exp %38 : vector<8x8xf32>
    %cst_17 = arith.constant dense<0.000000e+00> : vector<8xf32>
    %40 = vector.multi_reduction <add>, %39, %cst_17 [1] : vector<8x8xf32> to vector<8xf32>
    %41 = vector.shape_cast %40 : vector<8xf32> to vector<8x1xf32>
    %42 = tpu.reciprocal %41 {approx = true} : vector<8x1xf32> -> vector<8x1xf32>
    %43 = arith.truncf %39 : vector<8x8xf32> to vector<8x8xbf16>
    %cst_18 = arith.constant dense<0.000000e+00> : vector<8x16xf32>
    %44 = tpu.matmul %43, %33, %cst_18 {dimension_numbers = #tpu.dot_dimension_numbers<[1], [0], [0], [1], [0, 0, 1, 1], [], []>} : vector<8x8xbf16>, vector<8x16xbf16>, vector<8x16xf32> -> vector<8x16xf32>
    %45 = vector.broadcast %42 : vector<8x1xf32> to vector<8x16xf32>
    %46 = arith.mulf %44, %45 : vector<8x16xf32>
    %47 = arith.truncf %46 : vector<8x16xf32> to vector<8x16xbf16>
    %c1 = arith.constant 1 : index
    %c0_19 = arith.constant 0 : index
    %c0_20 = arith.constant 0 : index
    %48 = vector.load %arg3[%c1, %c0_19, %c0_20] : memref<4x16x32xbf16, #tpu.memory_space<vmem>>, vector<1x16x32xbf16>
    %49 = vector.shape_cast %48 : vector<1x16x32xbf16> to vector<16x32xbf16>
    %cst_21 = arith.constant dense<0.000000e+00> : vector<8x32xf32>
    %50 = tpu.matmul %47, %49, %cst_21 {dimension_numbers = #tpu.dot_dimension_numbers<[1], [0], [0], [1], [0, 0, 1, 1], [], []>} : vector<8x16xbf16>, vector<16x32xbf16>, vector<8x32xf32> -> vector<8x32xf32>
    %51 = arith.addf %30, %50 : vector<8x32xf32>
    %52 = vector.extract_strided_slice %6 {offsets = [0, 32], sizes = [8, 16], strides = [1, 1]} : vector<8x192xbf16> to vector<8x16xbf16>
    %53 = vector.extract_strided_slice %6 {offsets = [0, 96], sizes = [8, 16], strides = [1, 1]} : vector<8x192xbf16> to vector<8x16xbf16>
    %54 = vector.extract_strided_slice %6 {offsets = [0, 160], sizes = [8, 16], strides = [1, 1]} : vector<8x192xbf16> to vector<8x16xbf16>
    %cst_22 = arith.constant dense<0.000000e+00> : vector<8x8xf32>
    %55 = tpu.matmul %52, %53, %cst_22 {dimension_numbers = #tpu.dot_dimension_numbers<[1], [1], [0], [0], [0, 0, 1, 0], [], []>} : vector<8x16xbf16>, vector<8x16xbf16>, vector<8x8xf32> -> vector<8x8xf32>
    %cst_23 = arith.constant dense<0xFF800000> : vector<8xf32>
    %56 = vector.multi_reduction <maximumf>, %55, %cst_23 [1] : vector<8x8xf32> to vector<8xf32>
    %57 = vector.shape_cast %56 : vector<8xf32> to vector<8x1xf32>
    %58 = vector.broadcast %57 : vector<8x1xf32> to vector<8x8xf32>
    %59 = arith.subf %55, %58 : vector<8x8xf32>
    %60 = math.exp %59 : vector<8x8xf32>
    %cst_24 = arith.constant dense<0.000000e+00> : vector<8xf32>
    %61 = vector.multi_reduction <add>, %60, %cst_24 [1] : vector<8x8xf32> to vector<8xf32>
    %62 = vector.shape_cast %61 : vector<8xf32> to vector<8x1xf32>
    %63 = tpu.reciprocal %62 {approx = true} : vector<8x1xf32> -> vector<8x1xf32>
    %64 = arith.truncf %60 : vector<8x8xf32> to vector<8x8xbf16>
    %cst_25 = arith.constant dense<0.000000e+00> : vector<8x16xf32>
    %65 = tpu.matmul %64, %54, %cst_25 {dimension_numbers = #tpu.dot_dimension_numbers<[1], [0], [0], [1], [0, 0, 1, 1], [], []>} : vector<8x8xbf16>, vector<8x16xbf16>, vector<8x16xf32> -> vector<8x16xf32>
    %66 = vector.broadcast %63 : vector<8x1xf32> to vector<8x16xf32>
    %67 = arith.mulf %65, %66 : vector<8x16xf32>
    %68 = arith.truncf %67 : vector<8x16xf32> to vector<8x16xbf16>
    %c2 = arith.constant 2 : index
    %c0_26 = arith.constant 0 : index
    %c0_27 = arith.constant 0 : index
    %69 = vector.load %arg3[%c2, %c0_26, %c0_27] : memref<4x16x32xbf16, #tpu.memory_space<vmem>>, vector<1x16x32xbf16>
    %70 = vector.shape_cast %69 : vector<1x16x32xbf16> to vector<16x32xbf16>
    %cst_28 = arith.constant dense<0.000000e+00> : vector<8x32xf32>
    %71 = tpu.matmul %68, %70, %cst_28 {dimension_numbers = #tpu.dot_dimension_numbers<[1], [0], [0], [1], [0, 0, 1, 1], [], []>} : vector<8x16xbf16>, vector<16x32xbf16>, vector<8x32xf32> -> vector<8x32xf32>
    %72 = arith.addf %51, %71 : vector<8x32xf32>
    %73 = vector.extract_strided_slice %6 {offsets = [0, 48], sizes = [8, 16], strides = [1, 1]} : vector<8x192xbf16> to vector<8x16xbf16>
    %74 = vector.extract_strided_slice %6 {offsets = [0, 112], sizes = [8, 16], strides = [1, 1]} : vector<8x192xbf16> to vector<8x16xbf16>
    %75 = vector.extract_strided_slice %6 {offsets = [0, 176], sizes = [8, 16], strides = [1, 1]} : vector<8x192xbf16> to vector<8x16xbf16>
    %cst_29 = arith.constant dense<0.000000e+00> : vector<8x8xf32>
    %76 = tpu.matmul %73, %74, %cst_29 {dimension_numbers = #tpu.dot_dimension_numbers<[1], [1], [0], [0], [0, 0, 1, 0], [], []>} : vector<8x16xbf16>, vector<8x16xbf16>, vector<8x8xf32> -> vector<8x8xf32>
    %cst_30 = arith.constant dense<0xFF800000> : vector<8xf32>
    %77 = vector.multi_reduction <maximumf>, %76, %cst_30 [1] : vector<8x8xf32> to vector<8xf32>
    %78 = vector.shape_cast %77 : vector<8xf32> to vector<8x1xf32>
    %79 = vector.broadcast %78 : vector<8x1xf32> to vector<8x8xf32>
    %80 = arith.subf %76, %79 : vector<8x8xf32>
    %81 = math.exp %80 : vector<8x8xf32>
    %cst_31 = arith.constant dense<0.000000e+00> : vector<8xf32>
    %82 = vector.multi_reduction <add>, %81, %cst_31 [1] : vector<8x8xf32> to vector<8xf32>
    %83 = vector.shape_cast %82 : vector<8xf32> to vector<8x1xf32>
    %84 = tpu.reciprocal %83 {approx = true} : vector<8x1xf32> -> vector<8x1xf32>
    %85 = arith.truncf %81 : vector<8x8xf32> to vector<8x8xbf16>
    %cst_32 = arith.constant dense<0.000000e+00> : vector<8x16xf32>
    %86 = tpu.matmul %85, %75, %cst_32 {dimension_numbers = #tpu.dot_dimension_numbers<[1], [0], [0], [1], [0, 0, 1, 1], [], []>} : vector<8x8xbf16>, vector<8x16xbf16>, vector<8x16xf32> -> vector<8x16xf32>
    %87 = vector.broadcast %84 : vector<8x1xf32> to vector<8x16xf32>
    %88 = arith.mulf %86, %87 : vector<8x16xf32>
    %89 = arith.truncf %88 : vector<8x16xf32> to vector<8x16xbf16>
    %c3 = arith.constant 3 : index
    %c0_33 = arith.constant 0 : index
    %c0_34 = arith.constant 0 : index
    %90 = vector.load %arg3[%c3, %c0_33, %c0_34] : memref<4x16x32xbf16, #tpu.memory_space<vmem>>, vector<1x16x32xbf16>
    %91 = vector.shape_cast %90 : vector<1x16x32xbf16> to vector<16x32xbf16>
    %cst_35 = arith.constant dense<0.000000e+00> : vector<8x32xf32>
    %92 = tpu.matmul %89, %91, %cst_35 {dimension_numbers = #tpu.dot_dimension_numbers<[1], [0], [0], [1], [0, 0, 1, 1], [], []>} : vector<8x16xbf16>, vector<16x32xbf16>, vector<8x32xf32> -> vector<8x32xf32>
    %93 = arith.addf %72, %92 : vector<8x32xf32>
    %c0_36 = arith.constant 0 : index
    %c0_37 = arith.constant 0 : index
    %c0_38 = arith.constant 0 : index
    %94 = vector.load %arg5[%c0_36, %c0_37, %c0_38] : memref<1x8x32xf32, #tpu.memory_space<vmem>>, vector<1x8x32xf32>
    %95 = vector.shape_cast %94 : vector<1x8x32xf32> to vector<8x32xf32>
    %96 = vector.shape_cast %93 : vector<8x32xf32> to vector<1x8x32xf32>
    tpu.vector_store %arg5[%c0_36, %c0_37, %c0_38], %96 {strides = array<i32>} : memref<1x8x32xf32, #tpu.memory_space<vmem>>, vector<1x8x32xf32>,
    return
  }
  func.func @transform_0(%arg0: i32) -> (i32, i32, i32) {
    %c0_i32 = arith.constant 0 : i32
    %c0_i32_0 = arith.constant 0 : i32
    %c0_i32_1 = arith.constant 0 : i32
    return %arg0, %c0_i32, %c0_i32_0 : i32, i32, i32
  }
  func.func @transform_1(%arg0: i32) -> (i32, i32) {
    %c0_i32 = arith.constant 0 : i32
    %c0_i32_0 = arith.constant 0 : i32
    %c0_i32_1 = arith.constant 0 : i32
    return %c0_i32, %c0_i32_0 : i32, i32
  }
  func.func @transform_2(%arg0: i32) -> (i32, i32, i32) {
    %c0_i32 = arith.constant 0 : i32
    %c0_i32_0 = arith.constant 0 : i32
    %c0_i32_1 = arith.constant 0 : i32
    %c0_i32_2 = arith.constant 0 : i32
    return %c0_i32, %c0_i32_0, %c0_i32_1 : i32, i32, i32
  }
  func.func @transform_3(%arg0: i32) -> (i32, i32) {
    %c0_i32 = arith.constant 0 : i32
    %c0_i32_0 = arith.constant 0 : i32
    %c0_i32_1 = arith.constant 0 : i32
    return %c0_i32, %c0_i32_0 : i32, i32
  }
  func.func @transform_4(%arg0: i32) -> (i32, i32, i32) {
    %c0_i32 = arith.constant 0 : i32
    %c0_i32_0 = arith.constant 0 : i32
    %c0_i32_1 = arith.constant 0 : i32
    return %arg0, %c0_i32, %c0_i32_0 : i32, i32, i32
  }
}

</mosaic_0001>

<bundles_post_ra>
// kernel: tpu_custom_call.1
= control target key start
LH: loop header
LB: loop body
LE: loop exit
PB: predicated region body
PF: predicated region fallthrough
CT: control target
= control target key end

     0   :  { %9 = vsyncpa [#allocation3], 0  ;;  %s1790_s0 = inlined_call_operand.hbm [shape: f32[2,8,32], index: 0, kind: input, shape index: {}]   ;;  %s1791_s1 = inlined_call_operand.hbm [shape: bf16[32,192], index: 1, kind: input, shape index: {}]   ;;  %s1792_s2 = inlined_call_operand.hbm [shape: bf16[4,16,32], index: 2, kind: input, shape index: {}]   ;;  %s1793_s3 = inlined_call_operand.vmem [shape: f32[1,32], index: 3, kind: input, shape index: {}]   ;;  %s1794_s4 = inlined_call_operand.hbm [shape: f32[2,8,32], index: 4, kind: output, shape index: {}]  }
   0x1   :  { %11 = vsyncpa [#allocation3 + $0x1], 0 }
   0x2   :  { %12 = vsyncpa [#allocation6], 0 }
   0x3   :  { %13 = vsyncpa [#allocation4], 0 }
   0x4   :  { %15 = vsyncpa [#allocation4 + $0x1], 0  ;;  %s1518_s15 = smov 0   ;;  %s1520_s16 = smov 0  }
   0x5   :  { %s1522_s17 = smov 0   ;;  %s1524_s18 = smov 0  }
   0x6 LB: > { %s1539_s19 = sadd.s32 4294967295, %s1473_s18   ;;  %s1084_s20 = sadd.s32 4294967294, %s1473_s18   ;;  %s1473_s18 = sphi %s1524_s18, %s1816_s18   ;;  %s1469_s17 = sphi %s1522_s17, %s1815_s17   ;;  %s1465_s16 = sphi %s1520_s16, %s1814_s16   ;;  %s1461_s15 = sphi %s1518_s15, %s1813_s15  }
   0x7   : > { %p41_p0 = scmp.ne.s32.totalorder %s1465_s16, %s1461_s15  ;;  %p1795_p1 = scmp.eq.s32.totalorder %s1539_s19, 0 }
   0x8   : > { %p134_p3 = scmp.eq.s32.totalorder %s1084_s20, 1  ;;  %p1085_p5 = scmp.ge.s32.totalorder %s1473_s18, 1 }
   0x9   : > { %p1548_p4 = por %p1795_p1, %p41_p0  ;;  %p141_p7 = scmp.lt.s32.totalorder %s1473_s18, 3 }
   0xa   : > { %p1553_p6 = por %p134_p3, %p41_p0  ;;  %s1475_s24 = smov [#allocation5]  }
   0xb   : > { %s1799_s21 = scalar_select %p1548_p4, 1, 0 }
   0xc   : > { %s1800_s22 = scalar_select %p1553_p6, 1, 0 }
   0xd   : > { %p1558_p8 = pnand %p1085_p5, %p141_p7  ;;  %s153_s25 = sshll.u32 %s1475_s24, 4  ;;  %s154_s25 = int_to_ptr.vmem [resolvable:$true] %s153_s25 }
   0xe   : > { %s1476_s27 = smov [#allocation7]   ;;  %s1336_s29 = scalar_lea.vmem %s154_s25, 512 }
   0xf   : > { %s1801_s23 = scalar_select %p1558_p8, 1, 0 }
  0x10   : > { %p1230_p9 = pneg %p1558_p8  ;;  %s166_s28 = sshll.u32 %s1476_s27, 4  ;;  %s167_s28 = int_to_ptr.vmem [resolvable:$true] %s166_s28 }
  0x11   : > { %p1337_p13 = scmp.ne.s32.totalorder %s154_s25, %s1336_s29  ;;  %p1344_p5 = scmp.lt.s32.totalorder %s154_s25, %s154_s25 }
  0x12   : > { %p1567_p11 = pnand %p1230_p9, %p1795_p1  ;;  %p1345_p7 = scmp.lt.s32.totalorder %s1336_s29, %s1336_s29 }
  0x14   : > { %p1327_p12 = pneg %p1567_p11  ;;  %p1346_p10 = por %p1345_p7, %p1344_p5 }
  0x16   : > { %p1339_p0 = pnand %p1337_p13, %p1327_p12 }
  0x18   : > { %p1340_p3 = pneg %p1339_p0 }
  0x1a   : > { %p1347_p9 = pnand %p1346_p10, %p1340_p3 }
  0x1c   : > { %1350 = shalt.err (!%p1347_p9)
}
  0x1d   : > { %s1477_s30 = smov 128   ;;  %s1478_s5 = smov 8  }
  0x1e   : > { %1233 = dma.hbm_to_vmem [thread:$0]  (!%p1567_p11), %s1791_s1, 512, %s154_s25, [#allocation6], %s1477_s30, %s1477_s30, %s1478_s5  }
  0x1f   : > { %s1362_s8 = scalar_lea.vmem %s167_s28, 512  ;;  %p1370_p2 = scmp.lt.s32.totalorder %s167_s28, %s167_s28 }
  0x20   : > { %p1363_p1 = scmp.ne.s32.totalorder %s167_s28, %s1362_s8  ;;  %p1371_p6 = scmp.lt.s32.totalorder %s1362_s8, %s1362_s8 }
  0x22   : > { %p1365_p13 = pnand %p1363_p1, %p1327_p12  ;;  %p1372_p5 = por %p1371_p6, %p1370_p2 }
  0x24   : > { %p1366_p0 = pneg %p1365_p13 }
  0x26   : > { %p1373_p10 = pnand %p1372_p5, %p1366_p0 }
  0x28   : > { %1376 = shalt.err (!%p1373_p10)
}
  0x29   : > { %s1479_s9 = smov 64   ;;  %s1480_s10 = smov 4  }
  0x2a   : > { %1236 = dma.hbm_to_vmem [thread:$0]  (!%p1567_p11), %s1792_s2, 512, %s167_s28, [#allocation6], %s1479_s9, %s1479_s9, %s1480_s10  }
  0x2b   : > { %s1590_s13 = sadd.s32 1, %s1473_s18   ;;  %s28_s20 = sadd.s32 1, %s1469_s17 }
  0x2c   : > { %s25_s14 = ssub.s32 %s1473_s18, %s1590_s13  ;;  %p35_p2 = scmp.ne.s32.totalorder %s1469_s17, %s1465_s16 }
  0x2d   : > { %p26_p1 = scmp.eq.s32.totalorder %s25_s14, 0  ;;  %p36_p6 = scmp.eq.s32.totalorder %s1473_s18, 0 }
  0x2e   : > { %p1803_p3 = scmp.eq.s32.totalorder %s1539_s19, 1  ;;  %p1247_p9 = scmp.lt.s32.totalorder %s1473_s18, 2 }
  0x2f   : > { %s1599_s24 = scalar_select %p26_p1, %s1469_s17, %s28_s20  }
  0x30   : > { %p37_p12 = por %p36_p6, %p35_p2  ;;  %p1603_p7 = por %p1803_p3, %p35_p2 }
  0x31   : > { %s183_s26 = sand.u32 1, %s1469_s17   ;;  %s1090_s28 = sshll.u32 %s1473_s18, 7 }
  0x32   : > { %s1804_s25 = scalar_select %p1603_p7, 1, 0 }
  0x33   : > { %s1089_s27 = sshll.u32 %s183_s26, 3  ;;  %s1613_s5 = scalar_lea.hbm %s1790_s0, %s1090_s28 }
  0x34   : > { %s187_s6 = scalar_lea.vmem [#allocation2], %s1089_s27  ;;  %p1615_p11 = pnand %p1247_p9, %p37_p12 }
  0x35   : > { %s194_s7 = sshll.u32 %s187_s6, 4  ;;  %s184_s9 = scalar_lea.sflag [#allocation3], %s183_s26  ;;  %s195_s7 = int_to_ptr.vmem [resolvable:$true] %s194_s7 }
  0x36   : > { %s1377_s10 = scalar_lea.hbm %s1613_s5, 128  ;;  %p1379_p0 = pneg %p1615_p11 }
  0x37   : > { %p1378_p13 = scmp.ne.s32.totalorder %s1613_s5, %s1377_s10  ;;  %s1382_s14 = scalar_lea.hbm %s1790_s0, 256 }
  0x38   : > { %p1383_p1 = scmp.lt.s32.totalorder %s1613_s5, %s1790_s0  ;;  %p1384_p2 = scmp.lt.s32.totalorder %s1382_s14, %s1377_s10 }
  0x39   : > { %p1380_p5 = pnand %p1379_p0, %p1378_p13 }
  0x3a   : > { %p1385_p6 = por %p1384_p2, %p1383_p1 }
  0x3b   : > { %p1381_p10 = pneg %p1380_p5 }
  0x3d   : > { %p1386_p12 = pnand %p1385_p6, %p1381_p10 }
  0x3f   : > { %1389 = shalt.err (!%p1386_p12)
}
  0x40   : > { %s1390_s28 = scalar_lea.vmem %s195_s7, 128  ;;  %s1481_s26 = smov [#allocation2]  }
  0x41   : > { %p1391_p3 = scmp.ne.s32.totalorder %s195_s7, %s1390_s28  ;;  %s1395_s29 = sshll.u32 %s1481_s26, 4  ;;  %s1396_s29 = int_to_ptr.vmem [resolvable:$false] %s1395_s29 }
  0x42   : > { %s1397_s30 = scalar_lea.vmem %s1396_s29, 256  ;;  %p1398_p13 = scmp.lt.s32.totalorder %s195_s7, %s1396_s29 }
  0x43   : > { %p1393_p9 = pnand %p1391_p3, %p1379_p0  ;;  %p1399_p5 = scmp.lt.s32.totalorder %s1397_s30, %s1390_s28 }
  0x45   : > { %p1394_p7 = pneg %p1393_p9  ;;  %p1400_p4 = por %p1399_p5, %p1398_p13 }
  0x47   : > { %p1401_p8 = pnand %p1400_p4, %p1394_p7 }
  0x49   : > { %1404 = shalt.err (!%p1401_p8)
}
  0x4a   : > { %1240 = dma.hbm_to_vmem [thread:$0]  (!%p1615_p11), %s1613_s5, 128, %s195_s7, %s184_s9  }
  0x4b   : > { %p1806_p10 = scmp.ne.s32.totalorder %s1801_s23, 0 }
  0x4c   : > { %s1636_s6 = sand.u32 (!%p1806_p10), 1, %s1465_s16   ;;  %p1807_p4 = scmp.ne.s32.totalorder (!%p1806_p10), %s1799_s21, 0 }
  0x4d   : > { %203 = sbr.rel (%p1806_p10) target bundleno = 2251 (0x8cb), region = 36  ;;  %s1092_s10 = sshll.u32 (!%p1806_p10), %s1636_s6, 3 }
  0x4e   : > { %s206_s11 = scalar_lea.sflag (!%p1806_p10), [#allocation3], %s1636_s6  ;;  %s209_s12 = scalar_lea.vmem (!%p1806_p10), [#allocation2], %s1092_s10 }
  0x52   : > { %1448 = dma.done.wait (%p1807_p4), %s206_s11, 128  }
  0x53   : > { %1450 = vsyncadd (%p1807_p4), %s206_s11, 4294967168  ;;  %p1808_p8 = scmp.eq.s32.totalorder %s1539_s19, 0 }
  0x55   : > { %1452 = dma.done.wait (%p1808_p8), [#allocation6], 1024   ;;  %p1809_p7 = pmov %p1808_p8 }
  0x56   : > { %v1482_v0 = vmov 0   ;;  %v1299_v1 = vld [vmem:[#allocation5 + $0x14] ss:$8 sps:$4 sm:$0xff]   ;;  %v1301_v2 = vld [vmem:[#allocation5 + $0x10] ss:$8 sps:$4 sm:$0xff]   ;;  %vm270_vm0 = vcmask 261120  }
  0x57   : > { %1454 = vsyncadd (%p1809_p7), [#allocation6], 4294966272  ;;  %306 = vmatprep.mubr.bf16.mxu0 %v1482_v0  ;;  %286 = vmatprep.subr.bf16.mxu0 %v1299_v1  ;;  %v1302_v3 = vld [vmem:[#allocation5 + $0x4] ss:$8 sps:$4 sm:$0xff]   ;;  %v1304_v4 = vld [vmem:[#allocation5] ss:$8 sps:$4 sm:$0xff]  }
  0x58   : > { %v248_v5 = vld [vmem:[%s209_s12] sm:$0xff]  ;;  %287 = vmatpush1.bf16.msra.mxu0 %v1301_v2  ;;  %v1483_v7 = vmov 0.0   ;;  %vm1484_vm1 = vmmov 0   ;;  %vm389_vm2 = vcmask 1043456   ;;  %s1485_s21 = smov 48   ;;  %s1486_s23 = smov 64  }
  0x59   : > { %288 = vmatprep.subr.bf16.mxu0 %v1302_v3  ;;  %v249_v6 = vpack.c.bf16 %v248_v5, %v248_v5  ;;  %1146 = vmatprep.subr.bf16.mxu1 %v1483_v7  ;;  %s1487_s5 = smov 112   ;;  %vm327_vm3 = vcmask 130048   ;;  %vm374_vm4 = vcmask 64512   ;;  %s1488_s7 = smov 32   ;;  %v1305_v31 = vld [vmem:[#allocation7] sm:$0xff]   ;;  %v1306_v60 = vld [vmem:[#allocation7 + $0x8] sm:$0xff]  }
  0x5a   : > { %1148 = vmatprep.mubr.msk.bf16.mxu1 %vm1484_vm1, %v1483_v7  ;;  %s1489_s8 = smov 96   ;;  %s1490_s9 = smov 16  }
  0x5b   : > { %s1491_s14 = smov 80   ;;  %s1119_s28 = sshll.u32 %s1539_s19, 7 }
  0x5c   : > { %289 = vmatpush1.bf16.msra.mxu0 %v1304_v4  ;;  %s241_s26 = scalar_lea.vmem [#allocation8], %s1092_s10  ;;  %s1746_s12 = scalar_lea.hbm %s1794_s4, %s1119_s28 }
  0x5d   : > { %1152 = vmatprep.subr.bf16.mxu0 %v1483_v7  ;;  %s995_s29 = sshll.u32 %s241_s26, 4  ;;  %s982_s19 = scalar_lea.sflag [#allocation4], %s1636_s6  ;;  %s1748_s29 = int_to_ptr.vmem [resolvable:$true] %s995_s29 }
  0x5e   : > { %p1810_p0 = scmp.ne.s32.totalorder %s1804_s25, 0  ;;  %s1492_s10 = smov [#allocation8]  }
  0x5f   : > { %1100 = vmatmul.mubr.msk.bf16.vlgmr.msra.gmra.mxu0 %vm270_vm0, %v249_v6 }
  0x60   : > { %1154 = vmatprep.mubr.msk.bf16.mxu0 %vm1484_vm1, %v1483_v7 }
 0x11f   : > { %v308_v8 = vpop.f32.mrf.mxu0 }
 0x120   : > { %v1657_v9 = vpack.c.bf16 %v308_v8, %v308_v8 }
 0x121   : > { %v310_v10 = vpop.f32.mrf.mxu0 }
 0x122   : > { %v1659_v11 = vpack.c.bf16 %v310_v10, %v310_v10  ;;  %489 = vrot.lane.b32.xlu1 %v1657_v9, %s1485_s21  ;;  %325 = vrot.lane.b32.xlu0 %v1657_v9, %s1486_s23  ;;  %s1405_s21 = scalar_lea.vmem %s1748_s29, 128  ;;  %s1409_s23 = sshll.u32 %s1492_s10, 4  ;;  %s1410_s23 = int_to_ptr.vmem [resolvable:$false] %s1409_s23 }
 0x123   : > { %v312_v12 = vpop.f32.mrf.mxu0  ;;  %p1406_p11 = scmp.ne.s32.totalorder %s1748_s29, %s1405_s21  ;;  %p1412_p6 = scmp.lt.s32.totalorder %s1748_s29, %s1410_s23 }
 0x124   : > { %v391_v13 = vsel %vm389_vm2, %v1659_v11, 0 }
 0x125   : > { %v313_v14 = vpop.f32.mrf.mxu0  ;;  %1153 = vmatpush3.bf16.msra.mxu0 %v391_v13  ;;  %p1407_p1 = pnand %p1406_p11, %p1810_p0 }
 0x126   : > { %487 = vrot.lane.b32.xlu1 %v1657_v9, %s1487_s5  ;;  %1164 = vmatprep.subr.bf16.mxu0 %v1483_v7 }
 0x127   : > { %p1408_p2 = pneg %p1407_p1 }
 0x194   : > { %v326_v15 = vpop.permute.xlu0 %325  ;;  %v490_v26 = vpop.permute.xlu1 %489 }
 0x195   : > { %v332_v16 = vsel %vm327_vm3, %v326_v15, 0  ;;  %v495_v29 = vsel %vm327_vm3, %v490_v26, 0 }
 0x196   : > { %1147 = vmatpush3.bf16.xpose.msra.mxu1 %v332_v16 }
 0x197   : > { %1158 = vmatprep.subr.bf16.mxu1 %v1483_v7 }
 0x198   : > { %v488_v30 = vpop.permute.xlu1 %487 }
 0x19d   : > { %1149 = vmatmul.mubr.msk.bf16.vlgmr.msra.gmra.mxu1 %vm327_vm3, %v1657_v9 }
 0x19e   : > { %1160 = vmatprep.mubr.msk.bf16.mxu1 %vm1484_vm1, %v1483_v7  ;;  %1159 = vmatpush3.bf16.msra.mxu1 %v1305_v31 }
 0x19f   : > { %1170 = vmatprep.subr.bf16.mxu1 %v1483_v7 }
 0x25d   : > { %v368_v17 = vpop.f32.mrf.mxu1 }
 0x25e   : > { %v375_v18 = vsel %vm374_vm4, %v368_v17, -inf }
 0x25f   : > { %376 = vmax.xlane.f32.xlu0 %v375_v18  ;;  %v1150_v19 = vpop.f32.mrf.mxu1 }
 0x261   : > { %v371_v20 = vpop.f32.mrf.mxu1 }
 0x263   : > { %v1151_v21 = vpop.f32.mrf.mxu1 }
 0x2e8   : > { %v377_v22 = vpop.xlane.xlu0 %376 }
 0x2e9   : > { %v378_v23 = vsub.f32 %v368_v17, %v377_v22 }
 0x2eb   : > { %v379_v24 = vmul.f32 1.442695, %v378_v23  ;;  %v1101_v23 = vld [vmem:[%s1793_s3] ss:$0 sm:$0xff] }
 0x2ed   : > { %1309 = vpow2.f32 %v379_v24 }
 0x2fa   : > { %v1310_v25 = vpop.eup %1309 }
 0x2fb   : > { %v381_v27 = vsel %vm374_vm4, %v1310_v25, 0.0  ;;  %v385_v28 = vpack.c.bf16 %v1310_v25, %v1310_v25 }
 0x2fc   : > { %382 = vadd.xlane.f32.xlu1 %v381_v27 }
 0x2fd   : > { %1155 = vmatmul.mubr.msk.bf16.vlgmr.msra.gmra.mxu0 %vm374_vm4, %v385_v28 }
 0x2fe   : > { %1165 = vmatpush3.bf16.xpose.msra.mxu0 %v495_v29  ;;  %1166 = vmatprep.mubr.msk.bf16.mxu0 %vm1484_vm1, %v1483_v7 }
 0x2ff   : > { %1176 = vmatprep.subr.bf16.mxu0 %v1483_v7 }
 0x305   : > { %1167 = vmatmul.mubr.msk.bf16.vlgmr.msra.gmra.mxu0 %vm327_vm3, %v488_v30  ;;  %v1307_v30 = vld [vmem:[#allocation7 + $0x10] sm:$0xff]  }
 0x306   : > { %1178 = vmatprep.mubr.msk.bf16.mxu0 %vm1484_vm1, %v1483_v7  ;;  %1177 = vmatpush3.bf16.msra.mxu0 %v1306_v60 }
 0x307   : > { %1188 = vmatprep.subr.bf16.mxu0 %v1483_v7 }
 0x30d   : > { %654 = vrot.lane.b32.xlu1 %v1657_v9, %s1488_s7 }
 0x385   : > { %v383_v32 = vpop.xlane.xlu1 %382 }
 0x386   : > { %1311 = vrcp.f32 %v383_v32 }
 0x389   : > { %v655_v51 = vpop.permute.xlu1 %654 }
 0x38a   : > { %v660_v54 = vsel %vm327_vm3, %v655_v51, 0  ;;  %v1308_v51 = vld [vmem:[#allocation7 + $0x18] sm:$0xff]  }
 0x393   : > { %v1312_v33 = vpop.eup %1311 }
 0x3bd   : > { %v427_v34 = vpop.f32.mrf.mxu0 }
 0x3be   : > { %v433_v35 = vmul.f32 %v1312_v33, %v427_v34 }
 0x3bf   : > { %v1156_v36 = vpop.f32.mrf.mxu0 }
 0x3c0   : > { %v434_v37 = vpack.c.bf16 %v433_v35, %v433_v35 }
 0x3c1   : > { %v430_v38 = vpop.f32.mrf.mxu0 }
 0x3c2   : > { %1161 = vmatmul.mubr.msk.bf16.vlgmr.msra.gmra.mxu1 %vm327_vm3, %v434_v37 }
 0x3c3   : > { %v1157_v39 = vpop.f32.mrf.mxu0  ;;  %1172 = vmatprep.mubr.msk.bf16.mxu1 %vm1484_vm1, %v1483_v7 }
 0x3c5   : > { %v531_v40 = vpop.f32.mrf.mxu0 }
 0x3c6   : > { %v537_v41 = vsel %vm374_vm4, %v531_v40, -inf }
 0x3c7   : > { %538 = vmax.xlane.f32.xlu0 %v537_v41  ;;  %v1168_v42 = vpop.f32.mrf.mxu0 }
 0x3c9   : > { %v534_v43 = vpop.f32.mrf.mxu0 }
 0x3cb   : > { %v1169_v44 = vpop.f32.mrf.mxu0 }
 0x3dd   : > { %549 = vrot.lane.b32.xlu0 %v1659_v11, %s1487_s5  ;;  %s1411_s5 = scalar_lea.vmem %s1410_s23, 256 }
 0x3de   : > { %p1413_p12 = scmp.lt.s32.totalorder %s1411_s5, %s1405_s21 }
 0x3e0   : > { %p1414_p3 = por %p1413_p12, %p1412_p6 }
 0x3e1   : > { %652 = vrot.lane.b32.xlu0 %v1657_v9, %s1489_s8 }
 0x3e2   : > { %p1415_p9 = pnand %p1414_p3, %p1408_p2 }
 0x450   : > { %v539_v45 = vpop.xlane.xlu0 %538 }
 0x451   : > { %v540_v46 = vsub.f32 %v531_v40, %v539_v45 }
 0x453   : > { %v541_v47 = vmul.f32 1.442695, %v540_v46 }
 0x454   : > { %v550_v48 = vpop.permute.xlu0 %549 }
 0x455   : > { %1313 = vpow2.f32 %v541_v47  ;;  %v555_v49 = vsel %vm389_vm2, %v550_v48, 0 }
 0x456   : > { %1171 = vmatpush3.bf16.msra.mxu1 %v555_v49 }
 0x457   : > { %1182 = vmatprep.subr.bf16.mxu1 %v1483_v7 }
 0x458   : > { %v653_v55 = vpop.permute.xlu0 %652 }
 0x462   : > { %v1314_v50 = vpop.eup %1313 }
 0x463   : > { %v543_v52 = vsel %vm374_vm4, %v1314_v50, 0.0  ;;  %v547_v53 = vpack.c.bf16 %v1314_v50, %v1314_v50 }
 0x464   : > { %544 = vadd.xlane.f32.xlu1 %v543_v52 }
 0x465   : > { %1173 = vmatmul.mubr.msk.bf16.vlgmr.msra.gmra.mxu1 %vm374_vm4, %v547_v53 }
 0x466   : > { %1183 = vmatpush3.bf16.xpose.msra.mxu1 %v660_v54  ;;  %1184 = vmatprep.mubr.msk.bf16.mxu1 %vm1484_vm1, %v1483_v7 }
 0x467   : > { %1194 = vmatprep.subr.bf16.mxu1 %v1483_v7 }
 0x46d   : > { %1185 = vmatmul.mubr.msk.bf16.vlgmr.msra.gmra.mxu1 %vm327_vm3, %v653_v55 }
 0x46e   : > { %1196 = vmatprep.mubr.msk.bf16.mxu1 %vm1484_vm1, %v1483_v7  ;;  %1195 = vmatpush3.bf16.msra.mxu1 %v1307_v30 }
 0x46f   : > { %1206 = vmatprep.subr.bf16.mxu1 %v1483_v7 }
 0x475   : > { %818 = vrot.lane.b32.xlu1 %v1657_v9, %s1490_s9 }
 0x479   : > { %816 = vrot.lane.b32.xlu1 %v1657_v9, %s1491_s14 }
 0x482   : > { %v480_v56 = vpop.f32.mrf.mxu1 }
 0x483   : > { %v486_v24 = vadd.f32 %v1101_v23, %v480_v56 }
 0x484   : > { %v1162_v57 = vpop.f32.mrf.mxu1 }
 0x486   : > { %v483_v58 = vpop.f32.mrf.mxu1 }
 0x488   : > { %v1163_v59 = vpop.f32.mrf.mxu1 }
 0x4ed   : > { %v545_v61 = vpop.xlane.xlu1 %544 }
 0x4ee   : > { %1315 = vrcp.f32 %v545_v61 }
 0x4f1   : > { %v819_v18 = vpop.permute.xlu1 %818 }
 0x4f2   : > { %v824_v21 = vsel %vm327_vm3, %v819_v18, 0 }
 0x4f5   : > { %v817_v22 = vpop.permute.xlu1 %816 }
 0x4fb   : > { %v1316_v62 = vpop.eup %1315 }
 0x525   : > { %v591_v63 = vpop.f32.mrf.mxu1 }
 0x526   : > { %v597_v0 = vmul.f32 %v1316_v62, %v591_v63 }
 0x527   : > { %v1174_v1 = vpop.f32.mrf.mxu1 }
 0x528   : > { %v598_v2 = vpack.c.bf16 %v597_v0, %v597_v0 }
 0x529   : > { %v594_v3 = vpop.f32.mrf.mxu1 }
 0x52a   : > { %1179 = vmatmul.mubr.msk.bf16.vlgmr.msra.gmra.mxu0 %vm327_vm3, %v598_v2 }
 0x52b   : > { %v1175_v4 = vpop.f32.mrf.mxu1  ;;  %1190 = vmatprep.mubr.msk.bf16.mxu0 %vm1484_vm1, %v1483_v7 }
 0x52d   : > { %v696_v5 = vpop.f32.mrf.mxu1 }
 0x52e   : > { %v702_v6 = vsel %vm374_vm4, %v696_v5, -inf }
 0x52f   : > { %703 = vmax.xlane.f32.xlu0 %v702_v6  ;;  %v1186_v8 = vpop.f32.mrf.mxu1 }
 0x531   : > { %v699_v9 = vpop.f32.mrf.mxu1 }
 0x533   : > { %v1187_v10 = vpop.f32.mrf.mxu1 }
 0x545   : > { %713 = vrot.lane.b32.xlu0 %v1659_v11, %s1489_s8 }
 0x5b8   : > { %v704_v12 = vpop.xlane.xlu0 %703 }
 0x5b9   : > { %v705_v13 = vsub.f32 %v696_v5, %v704_v12 }
 0x5bb   : > { %v706_v14 = vmul.f32 1.442695, %v705_v13 }
 0x5bc   : > { %v714_v15 = vpop.permute.xlu0 %713 }
 0x5bd   : > { %1317 = vpow2.f32 %v706_v14  ;;  %v719_v16 = vsel %vm389_vm2, %v714_v15, 0 }
 0x5be   : > { %1189 = vmatpush3.bf16.msra.mxu0 %v719_v16 }
 0x5bf   : > { %1200 = vmatprep.subr.bf16.mxu0 %v1483_v7 }
 0x5ca   : > { %v1318_v17 = vpop.eup %1317 }
 0x5cb   : > { %v708_v19 = vsel %vm374_vm4, %v1318_v17, 0.0  ;;  %v712_v20 = vpack.c.bf16 %v1318_v17, %v1318_v17 }
 0x5cc   : > { %709 = vadd.xlane.f32.xlu0 %v708_v19 }
 0x5cd   : > { %1191 = vmatmul.mubr.msk.bf16.vlgmr.msra.gmra.mxu0 %vm374_vm4, %v712_v20 }
 0x5ce   : > { %1201 = vmatpush3.bf16.xpose.msra.mxu0 %v824_v21  ;;  %1202 = vmatprep.mubr.msk.bf16.mxu0 %vm1484_vm1, %v1483_v7 }
 0x5cf   : > { %1212 = vmatprep.subr.bf16.mxu0 %v1483_v7 }
 0x5d5   : > { %1203 = vmatmul.mubr.msk.bf16.vlgmr.msra.gmra.mxu0 %vm327_vm3, %v817_v22 }
 0x5d6   : > { %1214 = vmatprep.mubr.msk.bf16.mxu0 %vm1484_vm1, %v1483_v7  ;;  %1213 = vmatpush3.bf16.msra.mxu0 %v1308_v51 }
 0x5e2   : > { %877 = vrot.lane.b32.xlu0 %v1659_v11, %s1491_s14 }
 0x5ea   : > { %v645_v25 = vpop.f32.mrf.mxu0 }
 0x5eb   : > { %v651_v26 = vadd.f32 %v645_v25, %v486_v24 }
 0x5ec   : > { %v1180_v27 = vpop.f32.mrf.mxu0 }
 0x5ee   : > { %v648_v28 = vpop.f32.mrf.mxu0 }
 0x5f0   : > { %v1181_v29 = vpop.f32.mrf.mxu0 }
 0x655   : > { %v710_v31 = vpop.xlane.xlu0 %709 }
 0x656   : > { %1319 = vrcp.f32 %v710_v31 }
 0x659   : > { %v878_v11 = vpop.permute.xlu0 %877 }
 0x65a   : > { %v883_v38 = vsel %vm389_vm2, %v878_v11, 0 }
 0x663   : > { %v1320_v32 = vpop.eup %1319 }
 0x68d   : > { %v755_v33 = vpop.f32.mrf.mxu0 }
 0x68e   : > { %v761_v34 = vmul.f32 %v1320_v32, %v755_v33 }
 0x68f   : > { %v1192_v35 = vpop.f32.mrf.mxu0 }
 0x690   : > { %v762_v36 = vpack.c.bf16 %v761_v34, %v761_v34 }
 0x691   : > { %v758_v37 = vpop.f32.mrf.mxu0 }
 0x692   : > { %1197 = vmatmul.mubr.msk.bf16.vlgmr.msra.gmra.mxu1 %vm327_vm3, %v762_v36 }
 0x693   : > { %1207 = vmatpush3.bf16.msra.mxu1 %v883_v38  ;;  %v1193_v39 = vpop.f32.mrf.mxu0  ;;  %1208 = vmatprep.mubr.msk.bf16.mxu1 %vm1484_vm1, %v1483_v7 }
 0x695   : > { %v860_v40 = vpop.f32.mrf.mxu0 }
 0x696   : > { %v866_v41 = vsel %vm374_vm4, %v860_v40, -inf }
 0x697   : > { %867 = vmax.xlane.f32.xlu1 %v866_v41  ;;  %v1204_v42 = vpop.f32.mrf.mxu0 }
 0x699   : > { %v863_v43 = vpop.f32.mrf.mxu0 }
 0x69b   : > { %v1205_v44 = vpop.f32.mrf.mxu0 }
 0x720   : > { %v868_v45 = vpop.xlane.xlu1 %867 }
 0x721   : > { %v869_v46 = vsub.f32 %v860_v40, %v868_v45 }
 0x723   : > { %v870_v47 = vmul.f32 1.442695, %v869_v46 }
 0x725   : > { %1321 = vpow2.f32 %v870_v47 }
 0x732   : > { %v1322_v48 = vpop.eup %1321 }
 0x733   : > { %v872_v49 = vsel %vm374_vm4, %v1322_v48, 0.0  ;;  %v876_v50 = vpack.c.bf16 %v1322_v48, %v1322_v48 }
 0x734   : > { %873 = vadd.xlane.f32.xlu1 %v872_v49 }
 0x735   : > { %1209 = vmatmul.mubr.msk.bf16.vlgmr.msra.gmra.mxu1 %vm374_vm4, %v876_v50 }
 0x752   : > { %v809_v7 = vpop.f32.mrf.mxu1 }
 0x753   : > { %v815_v52 = vadd.f32 %v809_v7, %v651_v26 }
 0x754   : > { %v1198_v53 = vpop.f32.mrf.mxu1 }
 0x756   : > { %v812_v54 = vpop.f32.mrf.mxu1 }
 0x758   : > { %v1199_v55 = vpop.f32.mrf.mxu1 }
 0x7bd   : > { %v874_v56 = vpop.xlane.xlu1 %873 }
 0x7be   : > { %1323 = vrcp.f32 %v874_v56 }
 0x7cb   : > { %v1324_v57 = vpop.eup %1323 }
 0x7f5   : > { %v919_v58 = vpop.f32.mrf.mxu1 }
 0x7f6   : > { %v925_v59 = vmul.f32 %v1324_v57, %v919_v58 }
 0x7f7   : > { %v1210_v60 = vpop.f32.mrf.mxu1 }
 0x7f8   : > { %v926_v61 = vpack.c.bf16 %v925_v59, %v925_v59 }
 0x7f9   : > { %v922_v62 = vpop.f32.mrf.mxu1 }
 0x7fa   : > { %1215 = vmatmul.mubr.msk.bf16.vlgmr.msra.gmra.mxu0 %vm327_vm3, %v926_v61 }
 0x7fb   : > { %v1211_v63 = vpop.f32.mrf.mxu1 }
 0x8ba   : > { %v973_v0 = vpop.f32.mrf.mxu0 }
 0x8bb   : > { %v979_v1 = vadd.f32 %v973_v0, %v815_v52 }
 0x8bc   : > { %v1216_v2 = vpop.f32.mrf.mxu0 }
 0x8bd   : > { %980 = vst.msk [vmem:[%s241_s26] sm:$0xff] %vm270_vm0, %v979_v1 }
 0x8be   : > { %v976_v3 = vpop.f32.mrf.mxu0 }
 0x8bf   : > { %1418 = shalt.err (!%p1415_p9)
}
 0x8c0   : > { %s1419_s7 = scalar_lea.hbm %s1746_s12, 128  ;;  %s1423_s9 = scalar_lea.hbm %s1794_s4, 256 }
 0x8c1   : > { %p1420_p13 = scmp.ne.s32.totalorder %s1746_s12, %s1419_s7  ;;  %p1424_p4 = scmp.lt.s32.totalorder %s1746_s12, %s1794_s4 }
 0x8c2   : > { %p1425_p8 = scmp.lt.s32.totalorder %s1423_s9, %s1419_s7 }
 0x8c3   : > { %p1421_p5 = pnand %p1420_p13, %p1810_p0 }
 0x8c4   : > { %p1426_p7 = por %p1425_p8, %p1424_p4 }
 0x8c5   : > { %p1422_p10 = pneg %p1421_p5 }
 0x8c7   : > { %p1427_p11 = pnand %p1426_p7, %p1422_p10 }
 0x8c9   : > { %1430 = shalt.err (!%p1427_p11)
}
 0x8ca   : > { %1228 = dma.vmem_to_hbm [thread:$0]  (%p1810_p0), %s1748_s29, 128, %s1746_s12, %s982_s19   ;;  %v1217_v4 = vpop.f32.mrf.mxu0 }
 0x8cb PF: > { %s1007_s27 = sand.u32 1, %s1461_s15   ;;  %p1811_p1 = scmp.ne.s32.totalorder %s1800_s22, 0 }
 0x8cc   : > { %p1812_p2 = scmp.ge.s32.totalorder %s1473_s18, 2  ;;  %s1008_s28 = scalar_lea.sflag [#allocation4], %s1007_s27 }
 0x8ce   : > { %p1242_p6 = pnand %p1812_p2, %p1811_p1 }
 0x8d0   : > { %p1243_p12 = pneg %p1242_p6 }
 0x8d2   : > { %1456 = dma.done.wait (%p1243_p12), %s1008_s28, 128  }
 0x8d3   : > { %1458 = vsyncadd (%p1243_p12), %s1008_s28, 4294967168  ;;  %p18_p3 = scmp.ge.s32.totalorder %s1590_s13, 4   ;;  %s1813_s15 = smov %s1465_s16 }
 0x8d4   : > { %s1814_s16 = smov %s1469_s17  ;;  %s1815_s17 = smov %s1599_s24 }
 0x8d5   : > { %s1816_s18 = smov %s1590_s13  ;;  %20 = sbr.rel (!%p18_p3) target bundleno = 6 (0x6), region = 92 }
 0x8da   :  { %1013 = vsyncpa [#allocation3], 1 }
 0x8db   :  { %1015 = vsyncpa [#allocation3 + $0x1], 1 }
 0x8dc   :  { %1016 = vsyncpa [#allocation6], 1 }
 0x8dd   :  { %1017 = vsyncpa [#allocation4], 1 }
 0x8de   :  { %1019 = vsyncpa [#allocation4 + $0x1], 1 }

</bundles_post_ra>
